<compile_context>
chip_gen: v5e
topology: v5e:2x2
jax: 0.10.0
libtpu: 0.0.40
codegen_flags: <defaults>
</compile_context>

<pallas_src>
import functools

import jax
import jax.numpy as jnp
from jax.experimental import pallas as pl
from jax.experimental.pallas import tpu as pltpu


LEAKY_SLOPE = 0.02
LANE = 128
SUBLANE = 8
MXU_DTYPE = jnp.bfloat16      # MXU-native inputs; accumulation stays f32


def _round_up(x, m):
    return (x + m - 1) // m * m


# ---------------------------------------------------------------------------
# Pallas kernel: one output row-band x one Cout tile of a 3x3 conv.
#   x_ref : (1, 1, P*band, K)  bf16  banded (phase-stacked) kw-folded input
#   w_ref : (3, K, tn)         bf16  per-kh weight slices, K = 3*Cin
#   b_ref : (1, tn)            f32   bias tile
#   o_ref : (1, tm, tn)              output row-band x Cout tile
#   acc_ref: (tm, tn) f32 VMEM scratch accumulator (bounded vreg footprint)
# Three matmuls (one per kh tap), each reading a contiguous sublane-aligned
# (tm, K) window of the resident band.  Bias + LeakyReLU run once per tile.
# ---------------------------------------------------------------------------
def _conv3x3_kernel(x_ref, w_ref, b_ref, o_ref, acc_ref, *, taps, band, leaky):
    tm = o_ref.shape[1]
    (p0, o0), (p1, o1), (p2, o2) = taps        # static (phase, row-offset) per kh
    acc_ref[...] = jnp.dot(x_ref[0, 0, pl.ds(p0 * band + o0, tm), :], w_ref[0],
                           preferred_element_type=jnp.float32)
    acc_ref[...] += jnp.dot(x_ref[0, 0, pl.ds(p1 * band + o1, tm), :], w_ref[1],
                            preferred_element_type=jnp.float32)
    acc_ref[...] += jnp.dot(x_ref[0, 0, pl.ds(p2 * band + o2, tm), :], w_ref[2],
                            preferred_element_type=jnp.float32)
    y = acc_ref[...] + b_ref[...]
    if leaky:
        y = jnp.where(y >= 0, y, LEAKY_SLOPE * y)
    o_ref[0] = y.astype(o_ref.dtype)


# ---------------------------------------------------------------------------
# Host wrapper for one 3x3 conv (padding=1, stride 1 or 2), NHWC in / NHWC out.
# ---------------------------------------------------------------------------
def _conv3x3_pallas(x_nhwc, w_oihw, bias, *, stride, leaky, out_dtype,
                    tm_target=512, tn=LANE):
    n, h, w, cin = x_nhwc.shape
    cout = w_oihw.shape[0]
    cout_p = _round_up(cout, LANE)             # lane-dense weight/out tiles
    n_ct = cout_p // tn
    k = 3 * cin                                # kw folded into the contraction

    x = x_nhwc.astype(MXU_DTYPE)               # cast BEFORE all layout prep

    if stride == 1:
        ho, wo = h, w
        xp = jnp.pad(x, ((0, 0), (1, 1), (1, 1), (0, 0)))
        # partial im2col over kw only: (N, H+2, Wo, 3*Cin)
        xk = jnp.concatenate([xp[:, :, kw:kw + wo, :] for kw in range(3)],
                             axis=-1)
        xph = xk[:, None]                      # (N, P=1, rows, Wo, K)
        tap_rows = ((0, 0), (0, 1), (0, 2))    # (phase, image-row offset) per kh
    elif stride == 2:
        ho = (h - 1) // 2 + 1
        wo = (w - 1) // 2 + 1
        hp, wp = 2 * ho + 2, 2 * wo + 2        # even padded extents
        xp = jnp.pad(x, ((0, 0), (1, hp - (h + 1)), (1, wp - (w + 1)), (0, 0)))
        xk = jnp.concatenate([xp[:, :, kw:kw + 2 * wo:2, :] for kw in range(3)],
                             axis=-1)          # (N, hp, Wo, 3*Cin)
        # even/odd row phases: kh=0 -> even row h, kh=1 -> odd row h,
        # kh=2 -> even row h+1.
        xph = jnp.stack([xk[:, 0::2], xk[:, 1::2]], axis=1)  # (N, 2, hp/2, Wo, K)
        tap_rows = ((0, 0), (1, 0), (0, 1))
    else:
        raise NotImplementedError("stride must be 1 or 2")

    p = xph.shape[1]
    r_img = xph.shape[2]
    w_pad = _round_up(wo, SUBLANE)             # sublane-aligned row pitch
    if w_pad != wo:
        xph = jnp.pad(xph, ((0, 0), (0, 0), (0, 0), (0, w_pad - wo), (0, 0)))
    xf = xph.reshape(n, p, r_img * w_pad, k)   # per-phase flattened rows

    taps = tuple((ph, r * w_pad) for ph, r in tap_rows)   # 8-aligned offsets
    max_off = max(off for _, off in taps)

    m_out = ho * w_pad                         # flattened output rows
    # Big bands amortize grid-step overhead; keep halo duplication <= ~25%.
    tm = min(max(tm_target, 4 * max_off), _round_up(m_out, SUBLANE))
    n_bands = pl.cdiv(m_out, tm)
    m_alloc = n_bands * tm
    rows_needed = m_alloc + max_off
    if rows_needed > xf.shape[2]:
        xf = jnp.pad(xf, ((0, 0), (0, 0), (0, rows_needed - xf.shape[2]), (0, 0)))

    # Row bands with the halo duplicated in HBM -> non-overlapping Blocked
    # tiles, standard double-buffered pipelining, VMEM ~ (tm + halo) rows.
    band = tm + max_off
    xbands = jnp.stack(
        [xf[:, :, r * tm:r * tm + band, :] for r in range(n_bands)], axis=1)
    xbands = xbands.reshape(n, n_bands, p * band, k)

    # weights: (Cout, Cin, 3, 3) -> (kh, kw*Cin, Cout_pad) bf16 (kw folded in K)
    wt = jnp.transpose(w_oihw, (2, 3, 1, 0)).reshape(3, k, cout)
    wt = jnp.pad(wt, ((0, 0), (0, 0), (0, cout_p - cout))).astype(MXU_DTYPE)
    bt = jnp.pad(bias, (0, cout_p - cout)).reshape(1, cout_p).astype(jnp.float32)

    kernel = functools.partial(_conv3x3_kernel, taps=taps, band=band, leaky=leaky)

    # Generation-aware VMEM limit (128 MiB on v5e/v6e, 64 MiB on v7x).
    try:
        vmem_cap = int(pltpu.get_tpu_info().vmem_capacity_bytes)
    except Exception:                          # pragma: no cover - conservative
        vmem_cap = 64 << 20
    hard_cap = (vmem_cap * 3) // 4

    isz = jnp.dtype(MXU_DTYPE).itemsize
    osz = jnp.dtype(out_dtype).itemsize
    k_vmem = _round_up(k, LANE)                # lane padding of the K axis
    vmem_need = (2 * p * band * k_vmem * isz           # input band (dbl buf)
                 + 2 * 3 * _round_up(k, SUBLANE) * tn * isz
                 + 2 * SUBLANE * tn * 4
                 + 2 * tm * tn * osz                    # output tile (dbl buf)
                 + tm * tn * 4)                         # f32 accumulator scratch
    vmem_limit = int(min(max(2 * vmem_need + (4 << 20), 32 << 20), hard_cap))

    flops = 2 * n * n_bands * n_ct * tm * tn * 3 * k
    bytes_accessed = (xbands.size * isz + wt.size * isz + bt.size * 4
                      + n * m_alloc * cout_p * osz)

    out = pl.pallas_call(
        kernel,
        out_shape=jax.ShapeDtypeStruct((n, m_alloc, cout_p), out_dtype),
        grid_spec=pltpu.PrefetchScalarGridSpec(
            num_scalar_prefetch=0,
            grid=(n, n_bands, n_ct),
            in_specs=[
                # one (band + halo) tile per (batch, row-band); reused across j
                pl.BlockSpec((1, 1, p * band, k), lambda b, r, j: (b, r, 0, 0)),
                pl.BlockSpec((3, k, tn), lambda b, r, j: (0, 0, j)),
                pl.BlockSpec((1, tn), lambda b, r, j: (0, j)),
            ],
            out_specs=pl.BlockSpec((1, tm, tn), lambda b, r, j: (b, r, j)),
            scratch_shapes=[pltpu.VMEM((tm, tn), jnp.float32)],
        ),
        compiler_params=pltpu.CompilerParams(
            dimension_semantics=("parallel", "parallel", "parallel"),
            vmem_limit_bytes=vmem_limit,
        ),
        cost_estimate=pl.CostEstimate(
            flops=flops, transcendentals=0, bytes_accessed=bytes_accessed),
    )(xbands, wt, bt)

    # strip padded rows / channels / columns
    out = out[:, :m_out, :cout].reshape(n, ho, w_pad, cout)
    return out[:, :, :wo, :]


# ---------------------------------------------------------------------------
# down_block forward: conv(s, p=1) -> LeakyReLU(0.02) -> conv(s', p=1)
# ---------------------------------------------------------------------------
def down_block_forward(x_nchw, params, scale=2, tm_target=512):
    if scale == 2:
        strides = (2, 1)
    elif scale == 4:
        strides = (2, 2)
    else:
        # TODO(synk): scale=8 needs a stride-4 first conv (4-phase row decomp).
        raise NotImplementedError("scale=8 (stride-4 conv) not implemented")

    x = jnp.transpose(x_nchw, (0, 2, 3, 1))       # NCHW -> NHWC
    # conv1 (fused LeakyReLU); intermediate y1 kept in bf16 in HBM.
    y1 = _conv3x3_pallas(x, params["w1"], params["b1"], stride=strides[0],
                         leaky=True, out_dtype=jnp.bfloat16, tm_target=tm_target)
    # TODO(synk): fuse conv1->conv2 (keep the y1 band resident in VMEM) to kill
    # the remaining HBM round trip on y1.
    y2 = _conv3x3_pallas(y1, params["w2"], params["b2"], stride=strides[1],
                         leaky=False, out_dtype=jnp.float32, tm_target=tm_target)
    return jnp.transpose(y2, (0, 3, 1, 2))        # NHWC -> NCHW


def init_params(key, ich, mch, och):
    k1, k2, k3, k4 = jax.random.split(key, 4)
    s1 = 1.0 / (ich * 9) ** 0.5
    s2 = 1.0 / (mch * 9) ** 0.5
    return {
        "w1": jax.random.uniform(k1, (mch, ich, 3, 3), jnp.float32, -s1, s1),
        "b1": jax.random.uniform(k2, (mch,), jnp.float32, -s1, s1),
        "w2": jax.random.uniform(k3, (och, mch, 3, 3), jnp.float32, -s2, s2),
        "b2": jax.random.uniform(k4, (och,), jnp.float32, -s2, s2),
    }


if __name__ == "__main__":
    key = jax.random.PRNGKey(0)

    def ref_forward(x, p, strides):
        def conv(y, wgt, b, s):
            dn = jax.lax.conv_dimension_numbers(y.shape, wgt.shape,
                                                ("NCHW", "OIHW", "NCHW"))
            return jax.lax.conv_general_dilated(
                y, wgt, (s, s), ((1, 1), (1, 1)), dimension_numbers=dn,
                precision=jax.lax.Precision.HIGHEST) + b[None, :, None, None]
        y = conv(x, p["w1"], p["b1"], strides[0])
        y = jnp.where(y >= 0, y, LEAKY_SLOPE * y)
        return conv(y, p["w2"], p["b2"], strides[1])

    tests = [
        # (batch, ich, mch, och, spatial, scale, tm_target)
        (2, 4, 8, 8, 16, 2, 512),       # nominal small config
        (1, 3, 16, 160, 25, 4, 64),     # odd spatial, multi-band, 2 Cout tiles
    ]
    for (batch, ich, mch, och, spatial, scale, tm_t) in tests:
        kx, kp, key = jax.random.split(key, 3)
        x = jax.random.normal(kx, (batch, ich, spatial, spatial), jnp.float32)
        params = init_params(kp, ich, mch, och)
        strides = (2, 1) if scale == 2 else (2, 2)

        fwd = jax.jit(functools.partial(down_block_forward, scale=scale,
                                        tm_target=tm_t))
        out = jax.block_until_ready(fwd(x, params))
        ref = jax.block_until_ready(ref_forward(x, params, strides))

        assert out.shape == ref.shape, (out.shape, ref.shape)
        # bf16 MXU inputs + bf16 y1 intermediate vs. f32 reference.
        err = float(jnp.max(jnp.abs(out - ref)))
        assert jnp.allclose(out, ref, atol=3e-2, rtol=3e-2), err

    print("KERNEL_OK")
</pallas_src>

<mosaic_0001>
module attributes {stable_mosaic.version = 11 : i64} {
  func.func @_conv3x3_kernel(%arg0: i32, %arg1: i32, %arg2: i32, %arg3: memref<1x1x144x12xbf16, #tpu.memory_space<vmem>>, %arg4: memref<3x12x128xbf16, #tpu.memory_space<vmem>>, %arg5: memref<1x128xf32, #tpu.memory_space<vmem>>, %arg6: memref<1x64x128xbf16, #tpu.memory_space<vmem>>, %arg7: memref<64x128xf32, #tpu.memory_space<vmem>>) attributes {dimension_semantics = [#tpu.dimension_semantics<parallel>, #tpu.dimension_semantics<parallel>, #tpu.dimension_semantics<parallel>], iteration_bounds = array<i64: 2, 1, 1>, scalar_prefetch = 0 : i64, scratch_operands = 1 : i64, tpu.core_type = #tpu.core_type<tc>, window_params = [{transform_indices = @transform_0, window_bounds = array<i64: 1, 1, 144, 12>}, {transform_indices = @transform_1, window_bounds = array<i64: 3, 12, 128>}, {transform_indices = @transform_2, window_bounds = array<i64: 1, 128>}, {transform_indices = @transform_3, window_bounds = array<i64: 1, 64, 128>}]} {
    %c0 = arith.constant 0 : index
    %c0_0 = arith.constant 0 : index
    %c0_1 = arith.constant 0 : index
    %c0_2 = arith.constant 0 : index
    %0 = vector.load %arg3[%c0, %c0_0, %c0_1, %c0_2] : memref<1x1x144x12xbf16, #tpu.memory_space<vmem>>, vector<1x1x64x12xbf16>
    %1 = vector.shape_cast %0 : vector<1x1x64x12xbf16> to vector<64x12xbf16>
    %c0_3 = arith.constant 0 : index
    %c0_4 = arith.constant 0 : index
    %c0_5 = arith.constant 0 : index
    %2 = vector.load %arg4[%c0_3, %c0_4, %c0_5] : memref<3x12x128xbf16, #tpu.memory_space<vmem>>, vector<1x12x128xbf16>
    %3 = vector.shape_cast %2 : vector<1x12x128xbf16> to vector<12x128xbf16>
    %cst = arith.constant dense<0.000000e+00> : vector<64x128xf32>
    %4 = tpu.matmul %1, %3, %cst {dimension_numbers = #tpu.dot_dimension_numbers<[1], [0], [0], [1], [0, 0, 1, 1], [], []>} : vector<64x12xbf16>, vector<12x128xbf16>, vector<64x128xf32> -> vector<64x128xf32>
    %c0_6 = arith.constant 0 : index
    %c0_7 = arith.constant 0 : index
    %5 = vector.load %arg7[%c0_6, %c0_7] : memref<64x128xf32, #tpu.memory_space<vmem>>, vector<64x128xf32>
    tpu.vector_store %arg7[%c0_6, %c0_7], %4 {strides = array<i32>} : memref<64x128xf32, #tpu.memory_space<vmem>>, vector<64x128xf32>,
    %c0_8 = arith.constant 0 : index
    %c0_9 = arith.constant 0 : index
    %6 = vector.load %arg7[%c0_8, %c0_9] : memref<64x128xf32, #tpu.memory_space<vmem>>, vector<64x128xf32>
    %c0_10 = arith.constant 0 : index
    %c0_11 = arith.constant 0 : index
    %c72 = arith.constant 72 : index
    %c0_12 = arith.constant 0 : index
    %7 = vector.load %arg3[%c0_10, %c0_11, %c72, %c0_12] : memref<1x1x144x12xbf16, #tpu.memory_space<vmem>>, vector<1x1x64x12xbf16>
    %8 = vector.shape_cast %7 : vector<1x1x64x12xbf16> to vector<64x12xbf16>
    %c1 = arith.constant 1 : index
    %c0_13 = arith.constant 0 : index
    %c0_14 = arith.constant 0 : index
    %9 = vector.load %arg4[%c1, %c0_13, %c0_14] : memref<3x12x128xbf16, #tpu.memory_space<vmem>>, vector<1x12x128xbf16>
    %10 = vector.shape_cast %9 : vector<1x12x128xbf16> to vector<12x128xbf16>
    %cst_15 = arith.constant dense<0.000000e+00> : vector<64x128xf32>
    %11 = tpu.matmul %8, %10, %cst_15 {dimension_numbers = #tpu.dot_dimension_numbers<[1], [0], [0], [1], [0, 0, 1, 1], [], []>} : vector<64x12xbf16>, vector<12x128xbf16>, vector<64x128xf32> -> vector<64x128xf32>
    %12 = arith.addf %6, %11 : vector<64x128xf32>
    %c0_16 = arith.constant 0 : index
    %c0_17 = arith.constant 0 : index
    %13 = vector.load %arg7[%c0_16, %c0_17] : memref<64x128xf32, #tpu.memory_space<vmem>>, vector<64x128xf32>
    tpu.vector_store %arg7[%c0_16, %c0_17], %12 {strides = array<i32>} : memref<64x128xf32, #tpu.memory_space<vmem>>, vector<64x128xf32>,
    %c0_18 = arith.constant 0 : index
    %c0_19 = arith.constant 0 : index
    %14 = vector.load %arg7[%c0_18, %c0_19] : memref<64x128xf32, #tpu.memory_space<vmem>>, vector<64x128xf32>
    %c0_20 = arith.constant 0 : index
    %c0_21 = arith.constant 0 : index
    %c8 = arith.constant 8 : index
    %c0_22 = arith.constant 0 : index
    %15 = vector.load %arg3[%c0_20, %c0_21, %c8, %c0_22] : memref<1x1x144x12xbf16, #tpu.memory_space<vmem>>, vector<1x1x64x12xbf16>
    %16 = vector.shape_cast %15 : vector<1x1x64x12xbf16> to vector<64x12xbf16>
    %c2 = arith.constant 2 : index
    %c0_23 = arith.constant 0 : index
    %c0_24 = arith.constant 0 : index
    %17 = vector.load %arg4[%c2, %c0_23, %c0_24] : memref<3x12x128xbf16, #tpu.memory_space<vmem>>, vector<1x12x128xbf16>
    %18 = vector.shape_cast %17 : vector<1x12x128xbf16> to vector<12x128xbf16>
    %cst_25 = arith.constant dense<0.000000e+00> : vector<64x128xf32>
    %19 = tpu.matmul %16, %18, %cst_25 {dimension_numbers = #tpu.dot_dimension_numbers<[1], [0], [0], [1], [0, 0, 1, 1], [], []>} : vector<64x12xbf16>, vector<12x128xbf16>, vector<64x128xf32> -> vector<64x128xf32>
    %20 = arith.addf %14, %19 : vector<64x128xf32>
    %c0_26 = arith.constant 0 : index
    %c0_27 = arith.constant 0 : index
    %21 = vector.load %arg7[%c0_26, %c0_27] : memref<64x128xf32, #tpu.memory_space<vmem>>, vector<64x128xf32>
    tpu.vector_store %arg7[%c0_26, %c0_27], %20 {strides = array<i32>} : memref<64x128xf32, #tpu.memory_space<vmem>>, vector<64x128xf32>,
    %c0_28 = arith.constant 0 : index
    %c0_29 = arith.constant 0 : index
    %22 = vector.load %arg7[%c0_28, %c0_29] : memref<64x128xf32, #tpu.memory_space<vmem>>, vector<64x128xf32>
    %c0_30 = arith.constant 0 : index
    %c0_31 = arith.constant 0 : index
    %23 = vector.load %arg5[%c0_30, %c0_31] : memref<1x128xf32, #tpu.memory_space<vmem>>, vector<1x128xf32>
    %24 = vector.broadcast %23 : vector<1x128xf32> to vector<64x128xf32>
    %25 = arith.addf %22, %24 : vector<64x128xf32>
    %cst_32 = arith.constant 0.000000e+00 : f32
    %26 = vector.broadcast %cst_32 : f32 to vector<64x128xf32>
    %27 = arith.cmpf oge, %25, %26 : vector<64x128xf32>
    %cst_33 = arith.constant 2.000000e-02 : f32
    %28 = vector.broadcast %cst_33 : f32 to vector<64x128xf32>
    %29 = arith.mulf %28, %25 : vector<64x128xf32>
    %30 = arith.select %27, %25, %29 : vector<64x128xi1>, vector<64x128xf32>
    %31 = arith.truncf %30 : vector<64x128xf32> to vector<64x128xbf16>
    %c0_34 = arith.constant 0 : index
    %c0_35 = arith.constant 0 : index
    %c0_36 = arith.constant 0 : index
    %32 = vector.load %arg6[%c0_34, %c0_35, %c0_36] : memref<1x64x128xbf16, #tpu.memory_space<vmem>>, vector<1x64x128xbf16>
    %33 = vector.shape_cast %32 : vector<1x64x128xbf16> to vector<64x128xbf16>
    %34 = vector.shape_cast %31 : vector<64x128xbf16> to vector<1x64x128xbf16>
    tpu.vector_store %arg6[%c0_34, %c0_35, %c0_36], %34 {strides = array<i32>} : memref<1x64x128xbf16, #tpu.memory_space<vmem>>, vector<1x64x128xbf16>,
    return
  }
  func.func @transform_0(%arg0: i32, %arg1: i32, %arg2: i32) -> (i32, i32, i32, i32) {
    %c0_i32 = arith.constant 0 : i32
    %c0_i32_0 = arith.constant 0 : i32
    %c0_i32_1 = arith.constant 0 : i32
    return %arg0, %arg1, %c0_i32, %c0_i32_0 : i32, i32, i32, i32
  }
  func.func @transform_1(%arg0: i32, %arg1: i32, %arg2: i32) -> (i32, i32, i32) {
    %c0_i32 = arith.constant 0 : i32
    %c0_i32_0 = arith.constant 0 : i32
    %c0_i32_1 = arith.constant 0 : i32
    return %c0_i32, %c0_i32_0, %arg2 : i32, i32, i32
  }
  func.func @transform_2(%arg0: i32, %arg1: i32, %arg2: i32) -> (i32, i32) {
    %c0_i32 = arith.constant 0 : i32
    %c0_i32_0 = arith.constant 0 : i32
    return %c0_i32, %arg2 : i32, i32
  }
  func.func @transform_3(%arg0: i32, %arg1: i32, %arg2: i32) -> (i32, i32, i32) {
    %c0_i32 = arith.constant 0 : i32
    return %arg0, %arg1, %arg2 : i32, i32, i32
  }
}

module attributes {stable_mosaic.version = 11 : i64} {
  func.func @_conv3x3_kernel(%arg0: i32, %arg1: i32, %arg2: i32, %arg3: memref<1x1x80x24xbf16, #tpu.memory_space<vmem>>, %arg4: memref<3x24x128xbf16, #tpu.memory_space<vmem>>, %arg5: memref<1x128xf32, #tpu.memory_space<vmem>>, %arg6: memref<1x64x128xf32, #tpu.memory_space<vmem>>, %arg7: memref<64x128xf32, #tpu.memory_space<vmem>>) attributes {dimension_semantics = [#tpu.dimension_semantics<parallel>, #tpu.dimension_semantics<parallel>, #tpu.dimension_semantics<parallel>], iteration_bounds = array<i64: 2, 1, 1>, scalar_prefetch = 0 : i64, scratch_operands = 1 : i64, tpu.core_type = #tpu.core_type<tc>, window_params = [{transform_indices = @transform_0, window_bounds = array<i64: 1, 1, 80, 24>}, {transform_indices = @transform_1, window_bounds = array<i64: 3, 24, 128>}, {transform_indices = @transform_2, window_bounds = array<i64: 1, 128>}, {transform_indices = @transform_3, window_bounds = array<i64: 1, 64, 128>}]} {
    %c0 = arith.constant 0 : index
    %c0_0 = arith.constant 0 : index
    %c0_1 = arith.constant 0 : index
    %c0_2 = arith.constant 0 : index
    %0 = vector.load %arg3[%c0, %c0_0, %c0_1, %c0_2] : memref<1x1x80x24xbf16, #tpu.memory_space<vmem>>, vector<1x1x64x24xbf16>
    %1 = vector.shape_cast %0 : vector<1x1x64x24xbf16> to vector<64x24xbf16>
    %c0_3 = arith.constant 0 : index
    %c0_4 = arith.constant 0 : index
    %c0_5 = arith.constant 0 : index
    %2 = vector.load %arg4[%c0_3, %c0_4, %c0_5] : memref<3x24x128xbf16, #tpu.memory_space<vmem>>, vector<1x24x128xbf16>
    %3 = vector.shape_cast %2 : vector<1x24x128xbf16> to vector<24x128xbf16>
    %cst = arith.constant dense<0.000000e+00> : vector<64x128xf32>
    %4 = tpu.matmul %1, %3, %cst {dimension_numbers = #tpu.dot_dimension_numbers<[1], [0], [0], [1], [0, 0, 1, 1], [], []>} : vector<64x24xbf16>, vector<24x128xbf16>, vector<64x128xf32> -> vector<64x128xf32>
    %c0_6 = arith.constant 0 : index
    %c0_7 = arith.constant 0 : index
    %5 = vector.load %arg7[%c0_6, %c0_7] : memref<64x128xf32, #tpu.memory_space<vmem>>, vector<64x128xf32>
    tpu.vector_store %arg7[%c0_6, %c0_7], %4 {strides = array<i32>} : memref<64x128xf32, #tpu.memory_space<vmem>>, vector<64x128xf32>,
    %c0_8 = arith.constant 0 : index
    %c0_9 = arith.constant 0 : index
    %6 = vector.load %arg7[%c0_8, %c0_9] : memref<64x128xf32, #tpu.memory_space<vmem>>, vector<64x128xf32>
    %c0_10 = arith.constant 0 : index
    %c0_11 = arith.constant 0 : index
    %c8 = arith.constant 8 : index
    %c0_12 = arith.constant 0 : index
    %7 = vector.load %arg3[%c0_10, %c0_11, %c8, %c0_12] : memref<1x1x80x24xbf16, #tpu.memory_space<vmem>>, vector<1x1x64x24xbf16>
    %8 = vector.shape_cast %7 : vector<1x1x64x24xbf16> to vector<64x24xbf16>
    %c1 = arith.constant 1 : index
    %c0_13 = arith.constant 0 : index
    %c0_14 = arith.constant 0 : index
    %9 = vector.load %arg4[%c1, %c0_13, %c0_14] : memref<3x24x128xbf16, #tpu.memory_space<vmem>>, vector<1x24x128xbf16>
    %10 = vector.shape_cast %9 : vector<1x24x128xbf16> to vector<24x128xbf16>
    %cst_15 = arith.constant dense<0.000000e+00> : vector<64x128xf32>
    %11 = tpu.matmul %8, %10, %cst_15 {dimension_numbers = #tpu.dot_dimension_numbers<[1], [0], [0], [1], [0, 0, 1, 1], [], []>} : vector<64x24xbf16>, vector<24x128xbf16>, vector<64x128xf32> -> vector<64x128xf32>
    %12 = arith.addf %6, %11 : vector<64x128xf32>
    %c0_16 = arith.constant 0 : index
    %c0_17 = arith.constant 0 : index
    %13 = vector.load %arg7[%c0_16, %c0_17] : memref<64x128xf32, #tpu.memory_space<vmem>>, vector<64x128xf32>
    tpu.vector_store %arg7[%c0_16, %c0_17], %12 {strides = array<i32>} : memref<64x128xf32, #tpu.memory_space<vmem>>, vector<64x128xf32>,
    %c0_18 = arith.constant 0 : index
    %c0_19 = arith.constant 0 : index
    %14 = vector.load %arg7[%c0_18, %c0_19] : memref<64x128xf32, #tpu.memory_space<vmem>>, vector<64x128xf32>
    %c0_20 = arith.constant 0 : index
    %c0_21 = arith.constant 0 : index
    %c16 = arith.constant 16 : index
    %c0_22 = arith.constant 0 : index
    %15 = vector.load %arg3[%c0_20, %c0_21, %c16, %c0_22] : memref<1x1x80x24xbf16, #tpu.memory_space<vmem>>, vector<1x1x64x24xbf16>
    %16 = vector.shape_cast %15 : vector<1x1x64x24xbf16> to vector<64x24xbf16>
    %c2 = arith.constant 2 : index
    %c0_23 = arith.constant 0 : index
    %c0_24 = arith.constant 0 : index
    %17 = vector.load %arg4[%c2, %c0_23, %c0_24] : memref<3x24x128xbf16, #tpu.memory_space<vmem>>, vector<1x24x128xbf16>
    %18 = vector.shape_cast %17 : vector<1x24x128xbf16> to vector<24x128xbf16>
    %cst_25 = arith.constant dense<0.000000e+00> : vector<64x128xf32>
    %19 = tpu.matmul %16, %18, %cst_25 {dimension_numbers = #tpu.dot_dimension_numbers<[1], [0], [0], [1], [0, 0, 1, 1], [], []>} : vector<64x24xbf16>, vector<24x128xbf16>, vector<64x128xf32> -> vector<64x128xf32>
    %20 = arith.addf %14, %19 : vector<64x128xf32>
    %c0_26 = arith.constant 0 : index
    %c0_27 = arith.constant 0 : index
    %21 = vector.load %arg7[%c0_26, %c0_27] : memref<64x128xf32, #tpu.memory_space<vmem>>, vector<64x128xf32>
    tpu.vector_store %arg7[%c0_26, %c0_27], %20 {strides = array<i32>} : memref<64x128xf32, #tpu.memory_space<vmem>>, vector<64x128xf32>,
    %c0_28 = arith.constant 0 : index
    %c0_29 = arith.constant 0 : index
    %22 = vector.load %arg7[%c0_28, %c0_29] : memref<64x128xf32, #tpu.memory_space<vmem>>, vector<64x128xf32>
    %c0_30 = arith.constant 0 : index
    %c0_31 = arith.constant 0 : index
    %23 = vector.load %arg5[%c0_30, %c0_31] : memref<1x128xf32, #tpu.memory_space<vmem>>, vector<1x128xf32>
    %24 = vector.broadcast %23 : vector<1x128xf32> to vector<64x128xf32>
    %25 = arith.addf %22, %24 : vector<64x128xf32>
    %c0_32 = arith.constant 0 : index
    %c0_33 = arith.constant 0 : index
    %c0_34 = arith.constant 0 : index
    %26 = vector.load %arg6[%c0_32, %c0_33, %c0_34] : memref<1x64x128xf32, #tpu.memory_space<vmem>>, vector<1x64x128xf32>
    %27 = vector.shape_cast %26 : vector<1x64x128xf32> to vector<64x128xf32>
    %28 = vector.shape_cast %25 : vector<64x128xf32> to vector<1x64x128xf32>
    tpu.vector_store %arg6[%c0_32, %c0_33, %c0_34], %28 {strides = array<i32>} : memref<1x64x128xf32, #tpu.memory_space<vmem>>, vector<1x64x128xf32>,
    return
  }
  func.func @transform_0(%arg0: i32, %arg1: i32, %arg2: i32) -> (i32, i32, i32, i32) {
    %c0_i32 = arith.constant 0 : i32
    %c0_i32_0 = arith.constant 0 : i32
    %c0_i32_1 = arith.constant 0 : i32
    return %arg0, %arg1, %c0_i32, %c0_i32_0 : i32, i32, i32, i32
  }
  func.func @transform_1(%arg0: i32, %arg1: i32, %arg2: i32) -> (i32, i32, i32) {
    %c0_i32 = arith.constant 0 : i32
    %c0_i32_0 = arith.constant 0 : i32
    %c0_i32_1 = arith.constant 0 : i32
    return %c0_i32, %c0_i32_0, %arg2 : i32, i32, i32
  }
  func.func @transform_2(%arg0: i32, %arg1: i32, %arg2: i32) -> (i32, i32) {
    %c0_i32 = arith.constant 0 : i32
    %c0_i32_0 = arith.constant 0 : i32
    return %c0_i32, %arg2 : i32, i32
  }
  func.func @transform_3(%arg0: i32, %arg1: i32, %arg2: i32) -> (i32, i32, i32) {
    %c0_i32 = arith.constant 0 : i32
    return %arg0, %arg1, %arg2 : i32, i32, i32
  }
}

</mosaic_0001>

<bundles_post_ra>
// kernel: down_block_forward.2
= control target key start
LH: loop header
LB: loop body
LE: loop exit
PB: predicated region body
PF: predicated region fallthrough
CT: control target
= control target key end

     0   :  { %s942_s12 = smov 0   ;;  %s944_s13 = smov 0   ;;  %s1031_s0 = inlined_call_operand.vmem [shape: bf16[2,1,144,12], index: 0, kind: input, shape index: {}]   ;;  %s1032_s1 = inlined_call_operand.vmem [shape: bf16[3,12,128], index: 1, kind: input, shape index: {}]   ;;  %s1033_s2 = inlined_call_operand.vmem [shape: f32[1,128], index: 2, kind: input, shape index: {}]   ;;  %s1034_s3 = inlined_call_operand.vmem [shape: bf16[2,64,128], index: 3, kind: output, shape index: {}]  }
   0x1   :  { %s946_s14 = smov 0  }
   0x2 LB: > { %s32_s15 = sadd.s32 1, %s916_s13  ;;  %p748_p0 = scmp.ge.s32.totalorder %s920_s14, 1  ;;  %s920_s14 = sphi %s946_s14, %s13_s14   ;;  %s916_s13 = sphi %s944_s13, %s1036_s13   ;;  %s912_s12 = sphi %s942_s12, %s1035_s12  }
   0x3   : > { %p34_p1 = scmp.ge.s32.totalorder %s32_s15, 2  ;;  %p183_p2 = scmp.lt.s32.totalorder %s920_s14, 3 }
   0x5   : > { %s1038_s15 = smov (%p34_p1, %s32_s15), 0  ;;  %p184_p3 = pnand %p748_p0, %p183_p2 }
   0x6   : > { %p225_p4 = scmp.lt.s32.totalorder (!%p184_p3), %s912_s12, 1 }
   0x7   : > { %187 = sbr.rel (%p184_p3) target bundleno = 203 (0xcb), region = 32 }
   0xc   : > { %v770_v0 = vld [vmem:[%s1032_s1] sm:$0xf]  ;;  %v835_v1 = vld [vmem:[%s1032_s1] sm:$0x30]  ;;  %vm303_vm0 = vcmask 1045504   ;;  %s1040_s12 = smov (!%p225_p4, %s912_s12), 1 }
   0xd   : > { %v771_v2 = vor.u32 %v835_v1, %v770_v0  ;;  %v796_v3 = vld [vmem:[%s1032_s1 + $0x8] sm:$0xf]  ;;  %v840_v4 = vld [vmem:[%s1032_s1 + $0x8] sm:$0x30]  ;;  %v822_v5 = vld [vmem:[%s1032_s1 + $0x10] sm:$0xf] }
   0xe   : > { %v797_v6 = vor.u32 %v840_v4, %v796_v3  ;;  %v845_v7 = vld [vmem:[%s1032_s1 + $0x10] sm:$0x30]  ;;  %s872_s28 = smul.u32 72, %s1040_s12  ;;  %vm290_vm1 = vcmask 97280   ;;  %v1002_v32 = vld [vmem:[%s1033_s2] ss:$0 sm:$0xff] }
   0xf   : > { %v305_v8 = vsel %vm303_vm0, %v771_v2, 0  ;;  %v823_v9 = vor.u32 %v845_v7, %v822_v5  ;;  %s830_s7 = sshll.u32 %s1040_s12, 5 }
  0x10   : > { %314 = vmatpush.bf16.msra.mxu0 %v305_v8  ;;  %869 = vmatpush.bf16.msra.mxu3 %v305_v8  ;;  %v401_v10 = vsel %vm303_vm0, %v797_v6, 0  ;;  %s233_s4 = scalar_lea.vmem %s1031_s0, %s872_s28  ;;  %s1010_s10 = scalar_lea.vmem %s1034_s3, %s830_s7 }
  0x11   : > { %870 = vmatpush.bf16.msra.mxu1 %v401_v10  ;;  %v505_v11 = vsel %vm303_vm0, %v823_v9, 0  ;;  %v831_v12 = vld [vmem:[%s233_s4] sm:$0xff]  ;;  %v832_v13 = vld [vmem:[%s233_s4 + $0x8] sm:$0xff]  ;;  %v833_v16 = vld [vmem:[%s233_s4 + $0x10] sm:$0xff] }
  0x12   : > { %871 = vmatpush.bf16.msra.mxu2 %v505_v11  ;;  %v837_v14 = vld [vmem:[%s233_s4 + $0x2c] sm:$0xff]  ;;  %v836_v17 = vld [vmem:[%s233_s4 + $0x24] sm:$0xff]  ;;  %v838_v18 = vld [vmem:[%s233_s4 + $0x34] sm:$0xff] }
  0x13   : > { %v842_v15 = vld [vmem:[%s233_s4 + $0xc] sm:$0xff]  ;;  %772 = vmatmul.msk.bf16.vlgmr.msra.gmra.mxu0 %vm290_vm1, %v831_v12  ;;  %773 = vmatmul.msk.bf16.vlgmr.msra.gmra.mxu3 %vm290_vm1, %v832_v13  ;;  %v843_v19 = vld [vmem:[%s233_s4 + $0x14] sm:$0xff]  ;;  %v841_v21 = vld [vmem:[%s233_s4 + $0x4] sm:$0xff] }
  0x14   : > { %410 = vmatpush.bf16.msrb.mxu0 %v401_v10  ;;  %799 = vmatmul.msk.bf16.vlgmr.msra.gmra.mxu1 %vm290_vm1, %v837_v14  ;;  %v834_v20 = vld [vmem:[%s233_s4 + $0x18] sm:$0xff] }
  0x15   : > { %825 = vmatmul.msk.bf16.vlgmr.msra.gmra.mxu2 %vm290_vm1, %v842_v15  ;;  %v839_v22 = vld [vmem:[%s233_s4 + $0x3c] sm:$0xff] }
  0x16   : > { %v844_v23 = vld [vmem:[%s233_s4 + $0x1c] sm:$0xff] }
  0x18   : > { %514 = vmatpush.bf16.msra.mxu0 %v505_v11 }
  0x23   : > { %774 = vmatmul.msk.bf16.gmra.mxu3 %vm290_vm1, %v833_v16  ;;  %798 = vmatmul.msk.bf16.vlgmr.msrb.gmra.mxu0 %vm290_vm1, %v836_v17 }
  0x24   : > { %800 = vmatmul.msk.bf16.gmra.mxu1 %vm290_vm1, %v838_v18 }
  0x25   : > { %826 = vmatmul.msk.bf16.gmra.mxu2 %vm290_vm1, %v843_v19 }
  0x33   : > { %775 = vmatmul.msk.bf16.gmra.mxu3 %vm290_vm1, %v834_v20  ;;  %824 = vmatmul.msk.bf16.vlgmr.msra.gmra.mxu0 %vm290_vm1, %v841_v21 }
  0x34   : > { %801 = vmatmul.msk.bf16.gmra.mxu1 %vm290_vm1, %v839_v22 }
  0x35   : > { %827 = vmatmul.msk.bf16.gmra.mxu2 %vm290_vm1, %v844_v23 }
  0x90   : > { %v316_v24 = vpop.f32.mrf.mxu0 }
  0x91   : > { %v417_v25 = vpop.f32.mrf.mxu1 }
  0x96   : > { %v321_v26 = vpop.f32.mrf.mxu3 }
  0x97   : > { %v434_v27 = vadd.f32 %v417_v25, %v321_v26 }
  0x98   : > { %v521_v28 = vpop.f32.mrf.mxu2  ;;  %v318_v29 = vpop.f32.mrf.mxu0 }
  0x99   : > { %v419_v30 = vpop.f32.mrf.mxu1  ;;  %v538_v31 = vadd.f32 %v521_v28, %v434_v27 }
  0x9b   : > { %v566_v34 = vadd.f32 %v1002_v32, %v538_v31 }
  0x9d   : > { %v582_v40 = vmul.f32 0.02, %v566_v34  ;;  %vm574_vm2 = vcmp.ge.f32.partialorder %v566_v34, 0.0 }
  0x9e   : > { %v323_v33 = vpop.f32.mrf.mxu3 }
  0x9f   : > { %v435_v35 = vadd.f32 %v419_v30, %v323_v33  ;;  %v590_v44 = vsel %vm574_vm2, %v566_v34, %v582_v40 }
  0xa0   : > { %v523_v36 = vpop.f32.mrf.mxu2  ;;  %v412_v37 = vpop.f32.mrf.mxu0 }
  0xa1   : > { %v539_v38 = vadd.f32 %v523_v36, %v435_v35  ;;  %v422_v39 = vpop.f32.mrf.mxu1  ;;  %v432_v57 = vadd.f32 %v412_v37, %v316_v24 }
  0xa3   : > { %v567_v41 = vadd.f32 %v1002_v32, %v539_v38 }
  0xa5   : > { %vm575_vm3 = vcmp.ge.f32.partialorder %v567_v41, 0.0  ;;  %v583_v42 = vmul.f32 0.02, %v567_v41 }
  0xa6   : > { %v326_v43 = vpop.f32.mrf.mxu3 }
  0xa7   : > { %v591_v45 = vsel %vm575_vm3, %v567_v41, %v583_v42  ;;  %v436_v46 = vadd.f32 %v422_v39, %v326_v43 }
  0xa8   : > { %v526_v47 = vpop.f32.mrf.mxu2  ;;  %v854_v48 = vpack.c.bf16 %v591_v45, %v590_v44  ;;  %v414_v49 = vpop.f32.mrf.mxu0 }
  0xa9   : > { %v424_v50 = vpop.f32.mrf.mxu1  ;;  %v540_v51 = vadd.f32 %v526_v47, %v436_v46  ;;  %v433_v0 = vadd.f32 %v414_v49, %v318_v29 }
  0xaa   : > { %866 = vst [vmem:[%s1010_s10 + $0x8] sm:$0xff] %v854_v48  }
  0xab   : > { %v568_v53 = vadd.f32 %v1002_v32, %v540_v51 }
  0xad   : > { %v584_v59 = vmul.f32 0.02, %v568_v53  ;;  %vm576_vm4 = vcmp.ge.f32.partialorder %v568_v53, 0.0 }
  0xae   : > { %v328_v52 = vpop.f32.mrf.mxu3 }
  0xaf   : > { %v437_v54 = vadd.f32 %v424_v50, %v328_v52  ;;  %v592_v2 = vsel %vm576_vm4, %v568_v53, %v584_v59 }
  0xb0   : > { %v528_v55 = vpop.f32.mrf.mxu2  ;;  %v516_v56 = vpop.f32.mrf.mxu0 }
  0xb1   : > { %v541_v58 = vadd.f32 %v528_v55, %v437_v54  ;;  %v536_v61 = vadd.f32 %v516_v56, %v432_v57  ;;  %v427_v62 = vpop.f32.mrf.mxu1 }
  0xb3   : > { %v569_v60 = vadd.f32 %v1002_v32, %v541_v58  ;;  %v564_v4 = vadd.f32 %v1002_v32, %v536_v61 }
  0xb5   : > { %vm577_vm5 = vcmp.ge.f32.partialorder %v569_v60, 0.0  ;;  %v585_v63 = vmul.f32 0.02, %v569_v60  ;;  %v580_v10 = vmul.f32 0.02, %v564_v4  ;;  %vm572_vm6 = vcmp.ge.f32.partialorder %v564_v4, 0.0 }
  0xb6   : > { %v331_v1 = vpop.f32.mrf.mxu3 }
  0xb7   : > { %v593_v3 = vsel %vm577_vm5, %v569_v60, %v585_v63  ;;  %v438_v5 = vadd.f32 %v427_v62, %v331_v1  ;;  %v588_v16 = vsel %vm572_vm6, %v564_v4, %v580_v10 }
  0xb8   : > { %v531_v6 = vpop.f32.mrf.mxu2  ;;  %v859_v7 = vpack.c.bf16 %v593_v3, %v592_v2  ;;  %v518_v8 = vpop.f32.mrf.mxu0 }
  0xb9   : > { %v537_v9 = vadd.f32 %v518_v8, %v433_v0  ;;  %v542_v11 = vadd.f32 %v531_v6, %v438_v5  ;;  %v429_v14 = vpop.f32.mrf.mxu1 }
  0xba   : > { %867 = vst [vmem:[%s1010_s10 + $0x10] sm:$0xff] %v859_v7  }
  0xbb   : > { %v565_v12 = vadd.f32 %v1002_v32, %v537_v9  ;;  %v570_v17 = vadd.f32 %v1002_v32, %v542_v11 }
  0xbd   : > { %vm573_vm7 = vcmp.ge.f32.partialorder %v565_v12, 0.0  ;;  %v581_v13 = vmul.f32 0.02, %v565_v12  ;;  %v586_v23 = vmul.f32 0.02, %v570_v17  ;;  %vm578_vm8 = vcmp.ge.f32.partialorder %v570_v17, 0.0 }
  0xbe   : > { %v333_v15 = vpop.f32.mrf.mxu3 }
  0xbf   : > { %v589_v18 = vsel %vm573_vm7, %v565_v12, %v581_v13  ;;  %v439_v19 = vadd.f32 %v429_v14, %v333_v15  ;;  %v594_v26 = vsel %vm578_vm8, %v570_v17, %v586_v23 }
  0xc0   : > { %v849_v20 = vpack.c.bf16 %v589_v18, %v588_v16  ;;  %v533_v21 = vpop.f32.mrf.mxu2 }
  0xc1   : > { %v543_v22 = vadd.f32 %v533_v21, %v439_v19 }
  0xc2   : > { %850 = vst [vmem:[%s1010_s10] sm:$0xff] %v849_v20  }
  0xc3   : > { %v571_v24 = vadd.f32 %v1002_v32, %v543_v22 }
  0xc5   : > { %vm579_vm9 = vcmp.ge.f32.partialorder %v571_v24, 0.0  ;;  %v587_v25 = vmul.f32 0.02, %v571_v24 }
  0xc7   : > { %v595_v27 = vsel %vm579_vm9, %v571_v24, %v587_v25 }
  0xc8   : > { %v864_v28 = vpack.c.bf16 %v595_v27, %v594_v26 }
  0xca   : > { %868 = vst [vmem:[%s1010_s10 + $0x18] sm:$0xff] %v864_v28  }
  0xcb PF: > { %s13_s14 = sadd.s32 1, %s920_s14   ;;  %s1035_s12 = smov %s916_s13 }
  0xcc   : > { %p10_p5 = scmp.ge.s32.totalorder %s13_s14, 4   ;;  %s1036_s13 = smov %s1038_s15 }
  0xce   :  { %12 = sbr.rel (!%p10_p5) target bundleno = 2 (0x2), region = 70 }

// kernel: down_block_forward.3
= control target key start
LH: loop header
LB: loop body
LE: loop exit
PB: predicated region body
PF: predicated region fallthrough
CT: control target
= control target key end

     0   :  { %s907_s12 = smov 0   ;;  %s909_s13 = smov 0   ;;  %s987_s0 = inlined_call_operand.vmem [shape: bf16[2,1,80,24], index: 0, kind: input, shape index: {}]   ;;  %s988_s1 = inlined_call_operand.vmem [shape: bf16[3,24,128], index: 1, kind: input, shape index: {}]   ;;  %s989_s2 = inlined_call_operand.vmem [shape: f32[1,128], index: 2, kind: input, shape index: {}]   ;;  %s990_s3 = inlined_call_operand.vmem [shape: f32[2,64,128], index: 3, kind: output, shape index: {}]  }
   0x1   :  { %s911_s14 = smov 0  }
   0x2 LB: > { %s32_s15 = sadd.s32 1, %s881_s13  ;;  %p731_p0 = scmp.ge.s32.totalorder %s885_s14, 1  ;;  %s885_s14 = sphi %s911_s14, %s13_s14   ;;  %s881_s13 = sphi %s909_s13, %s992_s13   ;;  %s877_s12 = sphi %s907_s12, %s991_s12  }
   0x3   : > { %p34_p1 = scmp.ge.s32.totalorder %s32_s15, 2  ;;  %p183_p2 = scmp.lt.s32.totalorder %s885_s14, 3 }
   0x5   : > { %s994_s15 = smov (%p34_p1, %s32_s15), 0  ;;  %p184_p3 = pnand %p731_p0, %p183_p2 }
   0x6   : > { %p225_p4 = scmp.lt.s32.totalorder (!%p184_p3), %s877_s12, 1 }
   0x7   : > { %187 = sbr.rel (%p184_p3) target bundleno = 204 (0xcc), region = 32 }
   0xc   : > { %v265_v0 = vld [vmem:[%s988_s1 + $0x8] sm:$0xf]  ;;  %v761_v1 = vld [vmem:[%s988_s1 + $0x14] sm:$0xf]  ;;  %v788_v4 = vld [vmem:[%s988_s1 + $0x20] sm:$0xf] }
   0xd   : > { %v291_v2 = vunpack.c.l.b16 %v265_v0  ;;  %v394_v3 = vunpack.c.l.b16 %v761_v1  ;;  %vm308_vm0 = vcmask 1043456   ;;  %v503_v5 = vunpack.c.l.b16 %v788_v4  ;;  %s996_s12 = smov (!%p225_p4, %s877_s12), 1  ;;  %v820_v12 = vld [vmem:[%s988_s1] sm:$0xff]  ;;  %v825_v13 = vld [vmem:[%s988_s1 + $0xc] sm:$0xff]  ;;  %v830_v14 = vld [vmem:[%s988_s1 + $0x18] sm:$0xff] }
   0xe   : > { %s837_s22 = smul.u32 40, %s996_s12  ;;  %vm295_vm1 = vcmask 195584   ;;  %s815_s5 = sshll.u32 %s996_s12, 6  ;;  %v862_v32 = vld [vmem:[%s989_s2] ss:$0 sm:$0xff] }
   0xf   : > { %v293_v6 = vpack.c.b16 %v291_v2, %v291_v2  ;;  %v396_v7 = vpack.c.b16 %v394_v3, %v394_v3  ;;  %v505_v8 = vpack.c.b16 %v503_v5, %v503_v5  ;;  %s968_s10 = scalar_lea.vmem %s990_s3, %s815_s5 }
  0x10   : > { %s233_s4 = scalar_lea.vmem %s987_s0, %s837_s22 }
  0x11   : > { %v310_v9 = vsel %vm308_vm0, %v293_v6, 0  ;;  %v411_v10 = vsel %vm308_vm0, %v396_v7, 0  ;;  %v520_v11 = vsel %vm308_vm0, %v505_v8, 0  ;;  %v816_v15 = vld [vmem:[%s233_s4] sm:$0xff]  ;;  %v817_v16 = vld [vmem:[%s233_s4 + $0x8] sm:$0xff]  ;;  %v827_v18 = vld [vmem:[%s233_s4 + $0x10] sm:$0xff] }
  0x12   : > { %318 = vmatpush.bf16.msra.mxu0 %v310_v9  ;;  %831 = vmatpush.bf16.msra.mxu3 %v310_v9  ;;  %v822_v17 = vld [vmem:[%s233_s4 + $0xc] sm:$0xff]  ;;  %v821_v20 = vld [vmem:[%s233_s4 + $0x4] sm:$0xff]  ;;  %v823_v21 = vld [vmem:[%s233_s4 + $0x14] sm:$0xff] }
  0x13   : > { %833 = vmatpush.bf16.msra.mxu1 %v411_v10  ;;  %835 = vmatpush.bf16.msra.mxu2 %v520_v11  ;;  %v818_v19 = vld [vmem:[%s233_s4 + $0x10] sm:$0xff]  ;;  %v828_v22 = vld [vmem:[%s233_s4 + $0x18] sm:$0xff]  ;;  %v826_v24 = vld [vmem:[%s233_s4 + $0x8] sm:$0xff] }
  0x14   : > { %v819_v23 = vld [vmem:[%s233_s4 + $0x18] sm:$0xff]  ;;  %v829_v26 = vld [vmem:[%s233_s4 + $0x20] sm:$0xff] }
  0x15   : > { %v824_v25 = vld [vmem:[%s233_s4 + $0x1c] sm:$0xff] }
  0x16   : > { %319 = vmatpush.bf16.msra.mxu0 %v820_v12  ;;  %832 = vmatpush.bf16.msra.mxu3 %v820_v12 }
  0x17   : > { %834 = vmatpush.bf16.msra.mxu1 %v825_v13  ;;  %836 = vmatpush.bf16.msra.mxu2 %v830_v14 }
  0x19   : > { %755 = vmatmul.msk.bf16.vlgmr.msra.gmra.mxu0 %vm295_vm1, %v816_v15  ;;  %756 = vmatmul.msk.bf16.vlgmr.msra.gmra.mxu3 %vm295_vm1, %v817_v16 }
  0x1a   : > { %419 = vmatpush.bf16.msrb.mxu0 %v411_v10  ;;  %783 = vmatmul.msk.bf16.vlgmr.msra.gmra.mxu1 %vm295_vm1, %v822_v17 }
  0x1b   : > { %810 = vmatmul.msk.bf16.vlgmr.msra.gmra.mxu2 %vm295_vm1, %v827_v18 }
  0x1e   : > { %420 = vmatpush.bf16.msrb.mxu0 %v825_v13 }
  0x22   : > { %528 = vmatpush.bf16.msra.mxu0 %v520_v11 }
  0x26   : > { %529 = vmatpush.bf16.msra.mxu0 %v830_v14 }
  0x29   : > { %757 = vmatmul.msk.bf16.gmra.mxu3 %vm295_vm1, %v818_v19  ;;  %782 = vmatmul.msk.bf16.vlgmr.msrb.gmra.mxu0 %vm295_vm1, %v821_v20 }
  0x2a   : > { %784 = vmatmul.msk.bf16.gmra.mxu1 %vm295_vm1, %v823_v21 }
  0x2b   : > { %811 = vmatmul.msk.bf16.gmra.mxu2 %vm295_vm1, %v828_v22 }
  0x39   : > { %758 = vmatmul.msk.bf16.gmra.mxu3 %vm295_vm1, %v819_v23  ;;  %809 = vmatmul.msk.bf16.vlgmr.msra.gmra.mxu0 %vm295_vm1, %v826_v24 }
  0x3a   : > { %785 = vmatmul.msk.bf16.gmra.mxu1 %vm295_vm1, %v824_v25 }
  0x3b   : > { %812 = vmatmul.msk.bf16.gmra.mxu2 %vm295_vm1, %v829_v26 }
  0x96   : > { %v321_v27 = vpop.f32.mrf.mxu0 }
  0x97   : > { %v427_v28 = vpop.f32.mrf.mxu1 }
  0x9c   : > { %v326_v29 = vpop.f32.mrf.mxu3 }
  0x9d   : > { %v444_v30 = vadd.f32 %v427_v28, %v326_v29 }
  0x9e   : > { %v536_v31 = vpop.f32.mrf.mxu2  ;;  %v323_v33 = vpop.f32.mrf.mxu0 }
  0x9f   : > { %v553_v34 = vadd.f32 %v536_v31, %v444_v30  ;;  %v429_v35 = vpop.f32.mrf.mxu1 }
  0xa1   : > { %v581_v36 = vadd.f32 %v862_v32, %v553_v34 }
  0xa3   : > { %589 = vst [vmem:[%s968_s10 + $0x10] sm:$0xff] %v581_v36 }
  0xa4   : > { %v328_v37 = vpop.f32.mrf.mxu3 }
  0xa5   : > { %v445_v38 = vadd.f32 %v429_v35, %v328_v37 }
  0xa6   : > { %v538_v39 = vpop.f32.mrf.mxu2  ;;  %v422_v40 = vpop.f32.mrf.mxu0 }
  0xa7   : > { %v554_v41 = vadd.f32 %v538_v39, %v445_v38  ;;  %v432_v42 = vpop.f32.mrf.mxu1  ;;  %v442_v52 = vadd.f32 %v422_v40, %v321_v27 }
  0xa9   : > { %v582_v43 = vadd.f32 %v862_v32, %v554_v41 }
  0xab   : > { %590 = vst [vmem:[%s968_s10 + $0x18] sm:$0xff] %v582_v43 }
  0xac   : > { %v331_v44 = vpop.f32.mrf.mxu3 }
  0xad   : > { %v446_v45 = vadd.f32 %v432_v42, %v331_v44 }
  0xae   : > { %v541_v46 = vpop.f32.mrf.mxu2  ;;  %v424_v47 = vpop.f32.mrf.mxu0 }
  0xaf   : > { %v555_v48 = vadd.f32 %v541_v46, %v446_v45  ;;  %v434_v49 = vpop.f32.mrf.mxu1  ;;  %v443_v62 = vadd.f32 %v424_v47, %v323_v33 }
  0xb1   : > { %v583_v50 = vadd.f32 %v862_v32, %v555_v48 }
  0xb3   : > { %591 = vst [vmem:[%s968_s10 + $0x20] sm:$0xff] %v583_v50 }
  0xb4   : > { %v333_v51 = vpop.f32.mrf.mxu3 }
  0xb5   : > { %v447_v53 = vadd.f32 %v434_v49, %v333_v51 }
  0xb6   : > { %v543_v54 = vpop.f32.mrf.mxu2  ;;  %v531_v55 = vpop.f32.mrf.mxu0 }
  0xb7   : > { %v556_v56 = vadd.f32 %v543_v54, %v447_v53  ;;  %v551_v57 = vadd.f32 %v531_v55, %v442_v52  ;;  %v437_v60 = vpop.f32.mrf.mxu1 }
  0xb9   : > { %v584_v58 = vadd.f32 %v862_v32, %v556_v56  ;;  %v579_v59 = vadd.f32 %v862_v32, %v551_v57 }
  0xbb   : > { %592 = vst [vmem:[%s968_s10 + $0x28] sm:$0xff] %v584_v58 }
  0xbc   : > { %587 = vst [vmem:[%s968_s10] sm:$0xff] %v579_v59  ;;  %v336_v61 = vpop.f32.mrf.mxu3 }
  0xbd   : > { %v448_v63 = vadd.f32 %v437_v60, %v336_v61 }
  0xbe   : > { %v546_v0 = vpop.f32.mrf.mxu2  ;;  %v533_v1 = vpop.f32.mrf.mxu0 }
  0xbf   : > { %v557_v2 = vadd.f32 %v546_v0, %v448_v63  ;;  %v552_v3 = vadd.f32 %v533_v1, %v443_v62  ;;  %v439_v6 = vpop.f32.mrf.mxu1 }
  0xc1   : > { %v585_v4 = vadd.f32 %v862_v32, %v557_v2  ;;  %v580_v5 = vadd.f32 %v862_v32, %v552_v3 }
  0xc3   : > { %593 = vst [vmem:[%s968_s10 + $0x30] sm:$0xff] %v585_v4 }
  0xc4   : > { %588 = vst [vmem:[%s968_s10 + $0x8] sm:$0xff] %v580_v5  ;;  %v338_v7 = vpop.f32.mrf.mxu3 }
  0xc5   : > { %v449_v8 = vadd.f32 %v439_v6, %v338_v7 }
  0xc6   : > { %v548_v9 = vpop.f32.mrf.mxu2 }
  0xc7   : > { %v558_v10 = vadd.f32 %v548_v9, %v449_v8 }
  0xc9   : > { %v586_v11 = vadd.f32 %v862_v32, %v558_v10 }
  0xcb   : > { %594 = vst [vmem:[%s968_s10 + $0x38] sm:$0xff] %v586_v11 }
  0xcc PF: > { %s13_s14 = sadd.s32 1, %s885_s14   ;;  %s991_s12 = smov %s881_s13 }
  0xcd   : > { %p10_p5 = scmp.ge.s32.totalorder %s13_s14, 4   ;;  %s992_s13 = smov %s994_s15 }
  0xcf   :  { %12 = sbr.rel (!%p10_p5) target bundleno = 2 (0x2), region = 70 }

</bundles_post_ra>
